<compile_context>
chip_gen: v5e
topology: v5e:2x2
jax: 0.10.0
libtpu: 0.0.40
codegen_flags: <defaults>
</compile_context>

<pallas_src>
import jax
import jax.numpy as jnp
from jax.experimental import pallas as pl
from jax.experimental.pallas import tpu as pltpu

EMBED = 25      # embedding_size
FACTOR = 26     # factor_size
MAP = 9         # map_size
XY = 2          # xy_size / input_size
LANES = 128     # lane width of the packed parameter slab


def _r8(n):
    return (n + 7) // 8 * 8


def _layout(H):
    """Row offsets of each parameter block inside the packed (ROWS, 128) f32 slab.

    All multi-row weight blocks start on a multiple of 8 (sublane-tile aligned)."""
    assert H <= LANES and FACTOR + H <= LANES, "hidden_size too large for this packing"
    o = {}
    o["W_EMB"] = 0                          # (2, EMBED)
    o["B_EMB"] = 2                          # (1, EMBED)
    o["B_A"] = 3                            # (1, FACTOR + H)  = [b_fx | b_hx]
    o["B_FH"] = 4                           # (1, FACTOR)
    o["B_HF"] = 5                           # (1, H)
    o["B_OUT"] = 6                          # (1, MAP)         = b_ho @ W_ro + b_ro
    o["W_A"] = 8                            # (EMBED, FACTOR + H) = [W_fx | W_hx]
    o["W_FH"] = o["W_A"] + _r8(EMBED)       # (H, FACTOR)
    o["W_HF"] = o["W_FH"] + _r8(H)          # (FACTOR, H)
    o["W_OUT"] = o["W_HF"] + _r8(FACTOR)    # (H, MAP)         = W_ho @ W_ro
    o["ROWS"] = o["W_OUT"] + _r8(H)
    return o


def _make_kernel(H, o):
    FH = FACTOR + H

    def kernel(x_ref, h_ref, w_ref, map_ref, hid_ref):
        x = x_ref[...]                       # (B, 2)
        h = h_ref[...]                       # (B, H)

        # Embedding Linear(2, 25): K=2 contraction as two VPU broadcast-FMAs (no MXU).
        emb = (x[:, 0:1] * w_ref[o["W_EMB"]:o["W_EMB"] + 1, :EMBED]
               + x[:, 1:2] * w_ref[o["W_EMB"] + 1:o["W_EMB"] + 2, :EMBED]
               + w_ref[o["B_EMB"]:o["B_EMB"] + 1, :EMBED])
        emb = jnp.where(emb > 0, emb, 0.1 * emb)            # LeakyReLU(0.1)

        # Fused matmul sharing emb:  [fx | hx] = emb @ [W_fx | W_hx] + [b_fx | b_hx]
        fxhx = (jnp.dot(emb, w_ref[o["W_A"]:o["W_A"] + EMBED, :FH],
                        preferred_element_type=jnp.float32)
                + w_ref[o["B_A"]:o["B_A"] + 1, :FH])
        fx = fxhx[:, :FACTOR]                # (B, FACTOR)
        hx = fxhx[:, FACTOR:FH]              # (B, H)   (emb @ W_hx + b_hx)

        fh = (jnp.dot(h, w_ref[o["W_FH"]:o["W_FH"] + H, :FACTOR],
                      preferred_element_type=jnp.float32)
              + w_ref[o["B_FH"]:o["B_FH"] + 1, :FACTOR])
        f = fx * fh                          # multiplicative factors (B, FACTOR)

        h_new = jnp.tanh(jnp.dot(f, w_ref[o["W_HF"]:o["W_HF"] + FACTOR, :H],
                                 preferred_element_type=jnp.float32)
                         + hx
                         + w_ref[o["B_HF"]:o["B_HF"] + 1, :H])       # (B, H)

        # Readout folded through the RNN output layer: m = h_new @ (W_ho @ W_ro) + b_out
        m = (jnp.dot(h_new, w_ref[o["W_OUT"]:o["W_OUT"] + H, :MAP],
                     preferred_element_type=jnp.float32)
             + w_ref[o["B_OUT"]:o["B_OUT"] + 1, :MAP])               # (B, MAP)

        map_ref[...] = m
        hid_ref[...] = h_new

    return kernel


def pack_params(params):
    """Fold, fuse and pack all parameters into a single (ROWS, 128) f32 slab.

    Done ONCE at init time; the per-step kernel then needs only 3 input DMAs."""
    H = params["w_hf"].shape[1]
    o = _layout(H)

    w_out = params["w_ho"] @ params["w_ro"]                          # (H, MAP)
    b_out = params["b_ho"] @ params["w_ro"] + params["b_ro"]         # (1, MAP)
    w_a = jnp.concatenate([params["w_fx"], params["w_hx"]], axis=1)  # (EMBED, FACTOR+H)
    b_a = jnp.concatenate([params["b_fx"], params["b_hx"]], axis=1)  # (1, FACTOR+H)

    slab = jnp.zeros((o["ROWS"], LANES), jnp.float32)

    def put(s, r, a):
        return s.at[r:r + a.shape[0], :a.shape[1]].set(a.astype(jnp.float32))

    slab = put(slab, o["W_EMB"], params["w_emb"])
    slab = put(slab, o["B_EMB"], params["b_emb"])
    slab = put(slab, o["B_A"], b_a)
    slab = put(slab, o["B_FH"], params["b_fh"])
    slab = put(slab, o["B_HF"], params["b_hf"])
    slab = put(slab, o["B_OUT"], b_out)
    slab = put(slab, o["W_A"], w_a)
    slab = put(slab, o["W_FH"], params["w_fh"])
    slab = put(slab, o["W_HF"], params["w_hf"])
    slab = put(slab, o["W_OUT"], w_out)
    return slab


def multiplicative_model(x, hidden, slab):
    """One forward step. Returns (num, map, hidden)."""
    B = x.shape[0]
    H = hidden.shape[1]
    o = _layout(H)
    vmem = pl.BlockSpec(memory_space=pltpu.MemorySpace.VMEM)
    map_out, hid_out = pl.pallas_call(
        _make_kernel(H, o),
        out_shape=(
            jax.ShapeDtypeStruct((B, MAP), jnp.float32),
            jax.ShapeDtypeStruct((B, H), jnp.float32),
        ),
        in_specs=[vmem, vmem, vmem],
        out_specs=(vmem, vmem),
    )(x, hidden, slab)
    # Lane-dense outputs: the tiny sigmoid + 9-wide sum lives in the wrapper.
    num = jnp.sum(jax.nn.sigmoid(map_out), axis=1)
    return num, map_out, hid_out


def init_params(key, hidden_size, small_weights=True):
    """Deterministic parameter init matching the PyTorch layer shapes.

    nn.Linear(in, out) weight is (out, in); we store the transpose (in, out)."""
    std = 0.1 if small_weights else 1.0
    keys = jax.random.split(key, 14)

    def w(k, shape):
        return (std * jax.random.normal(k, shape)).astype(jnp.float32)

    H = hidden_size
    params = {
        "w_emb": w(keys[0], (XY, EMBED)),      "b_emb": w(keys[1], (1, EMBED)),
        "w_fx":  w(keys[2], (EMBED, FACTOR)),  "b_fx":  w(keys[3], (1, FACTOR)),
        "w_fh":  w(keys[4], (H, FACTOR)),      "b_fh":  w(keys[5], (1, FACTOR)),
        "w_hf":  w(keys[6], (FACTOR, H)),      "b_hf":  w(keys[7], (1, H)),
        "w_hx":  w(keys[8], (EMBED, H)),       "b_hx":  w(keys[9], (1, H)),
        "w_ho":  w(keys[10], (H, H)),          "b_ho":  w(keys[11], (1, H)),
        "w_ro":  w(keys[12], (H, MAP)),        "b_ro":  w(keys[13], (1, MAP)),
    }
    return params


def init_hidden(batch, hidden_size):
    return jnp.zeros((batch, hidden_size), dtype=jnp.float32)


def _leaky_relu(x, alpha=0.1):
    return jnp.where(x > 0, x, alpha * x)


def _reference(x, hidden, p):
    """Pure-JAX reference (unfolded, un-fused) for sanity checking."""
    emb = _leaky_relu(x @ p["w_emb"] + p["b_emb"])
    f = (emb @ p["w_fx"] + p["b_fx"]) * (hidden @ p["w_fh"] + p["b_fh"])
    h_new = jnp.tanh(f @ p["w_hf"] + p["b_hf"] + emb @ p["w_hx"] + p["b_hx"])
    out = h_new @ p["w_ho"] + p["b_ho"]
    m = out @ p["w_ro"] + p["b_ro"]
    sig = jax.nn.sigmoid(m)
    return jnp.sum(sig, axis=1), m, h_new


if __name__ == "__main__":
    batch = 2
    hidden_size = 32

    key = jax.random.PRNGKey(0)
    k_x, k_p = jax.random.split(key)

    x = jax.random.normal(k_x, (batch, XY), dtype=jnp.float32)   # (B, 2) xy input
    hidden = init_hidden(batch, hidden_size)                     # (B, H)
    params = init_params(k_p, hidden_size, small_weights=True)

    slab = pack_params(params)                                   # one-time fold/fuse/pack
    fwd = jax.jit(multiplicative_model)

    num, map_out, hid_out = fwd(x, hidden, slab)
    jax.block_until_ready((num, map_out, hid_out))

    # sanity check against the pure-JAX reference (folding changes f32 rounding slightly)
    num_r, map_r, hid_r = _reference(x, hidden, params)
    assert jnp.allclose(num, num_r, atol=1e-5), "num mismatch"
    assert jnp.allclose(map_out, map_r, atol=1e-5), "map mismatch"
    assert jnp.allclose(hid_out, hid_r, atol=1e-5), "hidden mismatch"

    print("KERNEL_OK")
</pallas_src>

<mosaic_0001>
module attributes {stable_mosaic.version = 11 : i64} {
  func.func @kernel(%arg0: memref<2x2xf32, #tpu.memory_space<vmem>>, %arg1: memref<2x32xf32, #tpu.memory_space<vmem>>, %arg2: memref<136x128xf32, #tpu.memory_space<vmem>>, %arg3: memref<2x9xf32, #tpu.memory_space<vmem>>, %arg4: memref<2x32xf32, #tpu.memory_space<vmem>>) attributes {dimension_semantics = [], scalar_prefetch = 0 : i64, scratch_operands = 0 : i64, tpu.core_type = #tpu.core_type<tc>} {
    %c0 = arith.constant 0 : index
    %c0_0 = arith.constant 0 : index
    %0 = vector.load %arg0[%c0, %c0_0] : memref<2x2xf32, #tpu.memory_space<vmem>>, vector<2x2xf32>
    %c0_1 = arith.constant 0 : index
    %c0_2 = arith.constant 0 : index
    %1 = vector.load %arg1[%c0_1, %c0_2] : memref<2x32xf32, #tpu.memory_space<vmem>>, vector<2x32xf32>
    %2 = vector.extract_strided_slice %0 {offsets = [0, 0], sizes = [2, 1], strides = [1, 1]} : vector<2x2xf32> to vector<2x1xf32>
    %c0_3 = arith.constant 0 : index
    %c0_4 = arith.constant 0 : index
    %3 = vector.load %arg2[%c0_3, %c0_4] : memref<136x128xf32, #tpu.memory_space<vmem>>, vector<1x25xf32>
    %4 = vector.broadcast %2 : vector<2x1xf32> to vector<2x25xf32>
    %5 = vector.broadcast %3 : vector<1x25xf32> to vector<2x25xf32>
    %6 = arith.mulf %4, %5 : vector<2x25xf32>
    %7 = vector.extract_strided_slice %0 {offsets = [0, 1], sizes = [2, 1], strides = [1, 1]} : vector<2x2xf32> to vector<2x1xf32>
    %c1 = arith.constant 1 : index
    %c0_5 = arith.constant 0 : index
    %8 = vector.load %arg2[%c1, %c0_5] : memref<136x128xf32, #tpu.memory_space<vmem>>, vector<1x25xf32>
    %9 = vector.broadcast %7 : vector<2x1xf32> to vector<2x25xf32>
    %10 = vector.broadcast %8 : vector<1x25xf32> to vector<2x25xf32>
    %11 = arith.mulf %9, %10 : vector<2x25xf32>
    %12 = arith.addf %6, %11 : vector<2x25xf32>
    %c2 = arith.constant 2 : index
    %c0_6 = arith.constant 0 : index
    %13 = vector.load %arg2[%c2, %c0_6] : memref<136x128xf32, #tpu.memory_space<vmem>>, vector<1x25xf32>
    %14 = vector.broadcast %13 : vector<1x25xf32> to vector<2x25xf32>
    %15 = arith.addf %12, %14 : vector<2x25xf32>
    %cst = arith.constant 0.000000e+00 : f32
    %16 = vector.broadcast %cst : f32 to vector<2x25xf32>
    %17 = arith.cmpf ogt, %15, %16 : vector<2x25xf32>
    %cst_7 = arith.constant 1.000000e-01 : f32
    %18 = vector.broadcast %cst_7 : f32 to vector<2x25xf32>
    %19 = arith.mulf %18, %15 : vector<2x25xf32>
    %20 = arith.select %17, %15, %19 : vector<2x25xi1>, vector<2x25xf32>
    %c8 = arith.constant 8 : index
    %c0_8 = arith.constant 0 : index
    %21 = vector.load %arg2[%c8, %c0_8] : memref<136x128xf32, #tpu.memory_space<vmem>>, vector<25x58xf32>
    %cst_9 = arith.constant dense<0.000000e+00> : vector<2x58xf32>
    %22 = tpu.matmul %20, %21, %cst_9 {dimension_numbers = #tpu.dot_dimension_numbers<[1], [0], [0], [1], [0, 0, 1, 1], [], []>} : vector<2x25xf32>, vector<25x58xf32>, vector<2x58xf32> -> vector<2x58xf32>
    %c3 = arith.constant 3 : index
    %c0_10 = arith.constant 0 : index
    %23 = vector.load %arg2[%c3, %c0_10] : memref<136x128xf32, #tpu.memory_space<vmem>>, vector<1x58xf32>
    %24 = vector.broadcast %23 : vector<1x58xf32> to vector<2x58xf32>
    %25 = arith.addf %22, %24 : vector<2x58xf32>
    %26 = vector.extract_strided_slice %25 {offsets = [0, 0], sizes = [2, 26], strides = [1, 1]} : vector<2x58xf32> to vector<2x26xf32>
    %27 = vector.extract_strided_slice %25 {offsets = [0, 26], sizes = [2, 32], strides = [1, 1]} : vector<2x58xf32> to vector<2x32xf32>
    %c40 = arith.constant 40 : index
    %c0_11 = arith.constant 0 : index
    %28 = vector.load %arg2[%c40, %c0_11] : memref<136x128xf32, #tpu.memory_space<vmem>>, vector<32x26xf32>
    %cst_12 = arith.constant dense<0.000000e+00> : vector<2x26xf32>
    %29 = tpu.matmul %1, %28, %cst_12 {dimension_numbers = #tpu.dot_dimension_numbers<[1], [0], [0], [1], [0, 0, 1, 1], [], []>} : vector<2x32xf32>, vector<32x26xf32>, vector<2x26xf32> -> vector<2x26xf32>
    %c4 = arith.constant 4 : index
    %c0_13 = arith.constant 0 : index
    %30 = vector.load %arg2[%c4, %c0_13] : memref<136x128xf32, #tpu.memory_space<vmem>>, vector<1x26xf32>
    %31 = vector.broadcast %30 : vector<1x26xf32> to vector<2x26xf32>
    %32 = arith.addf %29, %31 : vector<2x26xf32>
    %33 = arith.mulf %26, %32 : vector<2x26xf32>
    %c72 = arith.constant 72 : index
    %c0_14 = arith.constant 0 : index
    %34 = vector.load %arg2[%c72, %c0_14] : memref<136x128xf32, #tpu.memory_space<vmem>>, vector<26x32xf32>
    %cst_15 = arith.constant dense<0.000000e+00> : vector<2x32xf32>
    %35 = tpu.matmul %33, %34, %cst_15 {dimension_numbers = #tpu.dot_dimension_numbers<[1], [0], [0], [1], [0, 0, 1, 1], [], []>} : vector<2x26xf32>, vector<26x32xf32>, vector<2x32xf32> -> vector<2x32xf32>
    %36 = arith.addf %35, %27 : vector<2x32xf32>
    %c5 = arith.constant 5 : index
    %c0_16 = arith.constant 0 : index
    %37 = vector.load %arg2[%c5, %c0_16] : memref<136x128xf32, #tpu.memory_space<vmem>>, vector<1x32xf32>
    %38 = vector.broadcast %37 : vector<1x32xf32> to vector<2x32xf32>
    %39 = arith.addf %36, %38 : vector<2x32xf32>
    %40 = math.tanh %39 : vector<2x32xf32>
    %c104 = arith.constant 104 : index
    %c0_17 = arith.constant 0 : index
    %41 = vector.load %arg2[%c104, %c0_17] : memref<136x128xf32, #tpu.memory_space<vmem>>, vector<32x9xf32>
    %cst_18 = arith.constant dense<0.000000e+00> : vector<2x9xf32>
    %42 = tpu.matmul %40, %41, %cst_18 {dimension_numbers = #tpu.dot_dimension_numbers<[1], [0], [0], [1], [0, 0, 1, 1], [], []>} : vector<2x32xf32>, vector<32x9xf32>, vector<2x9xf32> -> vector<2x9xf32>
    %c6 = arith.constant 6 : index
    %c0_19 = arith.constant 0 : index
    %43 = vector.load %arg2[%c6, %c0_19] : memref<136x128xf32, #tpu.memory_space<vmem>>, vector<1x9xf32>
    %44 = vector.broadcast %43 : vector<1x9xf32> to vector<2x9xf32>
    %45 = arith.addf %42, %44 : vector<2x9xf32>
    %c0_20 = arith.constant 0 : index
    %c0_21 = arith.constant 0 : index
    %46 = vector.load %arg3[%c0_20, %c0_21] : memref<2x9xf32, #tpu.memory_space<vmem>>, vector<2x9xf32>
    tpu.vector_store %arg3[%c0_20, %c0_21], %45 {strides = array<i32>} : memref<2x9xf32, #tpu.memory_space<vmem>>, vector<2x9xf32>,
    %c0_22 = arith.constant 0 : index
    %c0_23 = arith.constant 0 : index
    %47 = vector.load %arg4[%c0_22, %c0_23] : memref<2x32xf32, #tpu.memory_space<vmem>>, vector<2x32xf32>
    tpu.vector_store %arg4[%c0_22, %c0_23], %40 {strides = array<i32>} : memref<2x32xf32, #tpu.memory_space<vmem>>, vector<2x32xf32>,
    return
  }
}

</mosaic_0001>

<bundles_post_ra>
// kernel: multiplicative_model.1
= control target key start
LH: loop header
LB: loop body
LE: loop exit
PB: predicated region body
PF: predicated region fallthrough
CT: control target
= control target key end

     0   :  { %10 = vsyncpa [#allocation3], 0  ;;  %s423_s0 = inlined_call_operand.hbm [shape: f32[2,2], index: 0, kind: input, shape index: {}]   ;;  %s424_s1 = inlined_call_operand.hbm [shape: f32[2,32], index: 1, kind: input, shape index: {}]   ;;  %s425_s2 = inlined_call_operand.hbm [shape: f32[136,128], index: 2, kind: input, shape index: {}]   ;;  %s426_s3 = inlined_call_operand.vmem [shape: f32[2,9], index: 3, kind: output, shape index: {0}]   ;;  %s427_s4 = inlined_call_operand.hbm [shape: f32[2,32], index: 4, kind: output, shape index: {1}]  }
   0x1   :  { %11 = vsyncpa [#allocation6], 0  ;;  %s29_s17 = sshll.u32 %s424_s1, 4  ;;  %s30_s17 = int_to_ptr.hbm [resolvable:$true] %s29_s17 }
   0x2   :  { %12 = vsyncpa [#allocation4], 0  ;;  %s372_s18 = smov [#allocation5]   ;;  %s18_s22 = sshll.u32 %s423_s0, 4  ;;  %s19_s22 = int_to_ptr.hbm [resolvable:$true] %s18_s22 }
   0x3   :  { %s31_s19 = sshll.u32 %s372_s18, 4  ;;  %s373_s23 = smov [#allocation2]   ;;  %s32_s19 = int_to_ptr.vmem [resolvable:$true] %s31_s19 }
   0x4   :  { %34 = dma.hbm_to_vmem [thread:$0]  %s30_s17, 32, %s32_s19, [#allocation6]  }
   0x5   :  { %s20_s24 = sshll.u32 %s373_s23, 4  ;;  %s39_s27 = sshll.u32 %s425_s2, 4  ;;  %s21_s24 = int_to_ptr.vmem [resolvable:$true] %s20_s24  ;;  %s40_s27 = int_to_ptr.hbm [resolvable:$true] %s39_s27 }
   0x6   :  { %23 = dma.hbm_to_vmem [thread:$0]  %s19_s22, 32, %s21_s24, [#allocation3]  }
   0x7   :  { %s374_s1 = smov [#allocation7]   ;;  %s375_s29 = smov 128  }
   0x8   :  { %s41_s28 = sshll.u32 %s374_s1, 4  ;;  %s376_s30 = smov 8   ;;  %s42_s28 = int_to_ptr.vmem [resolvable:$true] %s41_s28 }
   0x9   :  { %47 = dma.hbm_to_vmem [thread:$0]  %s40_s27, 2176, %s42_s28, [#allocation6], %s375_s29, %s375_s29, %s376_s30  }
   0xa   :  { %366 = dma.done.wait [#allocation3], 32  }
   0xb   :  { %367 = vsyncadd [#allocation3], 4294967264 }
   0xc   :  { %368 = dma.done.wait [#allocation6], 2208  }
   0xd   :  { %369 = vsyncadd [#allocation6], 4294965088  ;;  %v377_v0 = vmov 0   ;;  %v60_v1 = vld [vmem:[#allocation2] sm:$0x3]  ;;  %v378_v2 = vmov 1  }
   0xe   :  { %259 = vset.pattern.permute.xlu0 %v377_v0  ;;  %v87_v3 = vld [vmem:[#allocation7 + $0x20] sm:$0x1]  ;;  %vm94_vm0 = vcmask 1040384   ;;  %v86_v5 = vld [vmem:[#allocation7 + $0x18] sm:$0xff]  ;;  %v85_v7 = vld [vmem:[#allocation7 + $0x10] sm:$0xff]  ;;  %vm124_vm1 = vcmask 261120  }
   0xf   :  { %65 = vperm.xlu0 %259, %v60_v1   ;;  %v121_v4 = vld [vmem:[#allocation7 + $0x40] sm:$0xff]  ;;  %244 = vmatpush.msk.msra.mxu0 %vm94_vm0, %v87_v3  ;;  %v120_v6 = vld [vmem:[#allocation7 + $0x38] sm:$0xff]  ;;  %v119_v8 = vld [vmem:[#allocation7 + $0x30] sm:$0xff]  ;;  %vm161_vm2 = vcmask 1041408   ;;  %vm90_vm4 = vcmask 203776   ;;  %vm157_vm5 = vcmask 211968  }
  0x10   :  { %140 = vmatpush.msra.mxu1 %v121_v4  ;;  %v84_v9 = vld [vmem:[#allocation7 + $0x8] sm:$0xff]  ;;  %v61_v11 = vld [vmem:[#allocation5] sm:$0x3]  ;;  %v152_v12 = vld [vmem:[#allocation7 + $0x60] sm:$0x3]  ;;  %s379_s0 = smov 102  }
  0x11   :  { %111 = vmatpush.msra.mxu0 %v86_v5  ;;  %v118_v10 = vld [vmem:[#allocation7 + $0x28] sm:$0xff]  ;;  %247 = vmatpush.msk.msra.mxu2 %vm161_vm2, %v152_v12  ;;  %v261_v14 = vld [vmem:[#allocation7] ss:$0 sm:$0xff]  ;;  %v262_v15 = vld [vmem:[#allocation7 + $0x1] ss:$0 sm:$0xff]  ;;  %vm220_vm6 = vcmask 254976  }
  0x12   :  { %141 = vmatpush.msra.mxu1 %v120_v6  ;;  %v263_v18 = vld [vmem:[#allocation7 + $0x2] ss:$0 sm:$0xff]  ;;  %v151_v24 = vld [vmem:[#allocation7 + $0x58] sm:$0xff]  ;;  %v150_v25 = vld [vmem:[#allocation7 + $0x50] sm:$0xff]  ;;  %s380_s2 = smov [#allocation8]   ;;  %s231_s8 = sshll.u32 %s427_s4, 4  ;;  %s232_s8 = int_to_ptr.hbm [resolvable:$true] %s231_s8 }
  0x13   :  { %112 = vmatpush.msra.mxu0 %v85_v7  ;;  %178 = vmatpush.msra.mxu2 %v151_v24  ;;  %v149_v26 = vld [vmem:[#allocation7 + $0x48] sm:$0xff]  ;;  %v265_v27 = vld [vmem:[#allocation7 + $0x4] ss:$0 sm:$0xff]  ;;  %v264_v29 = vld [vmem:[#allocation7 + $0x3] ss:$0 sm:$0xff]  ;;  %s229_s5 = sshll.u32 %s380_s2, 4  ;;  %s230_s5 = int_to_ptr.vmem [resolvable:$true] %s229_s5 }
  0x14   :  { %142 = vmatpush.msra.mxu1 %v119_v8  ;;  %v192_v34 = vld [vmem:[#allocation7 + $0x80] sm:$0xff]  ;;  %v191_v35 = vld [vmem:[#allocation7 + $0x78] sm:$0xff]  ;;  %v190_v36 = vld [vmem:[#allocation7 + $0x70] sm:$0xff]  ;;  %vm218_vm7 = vcmask 66560  }
  0x15   :  { %113 = vmatpush.msra.mxu0 %v84_v9  ;;  %179 = vmatpush.msra.mxu2 %v150_v25  ;;  %v189_v37 = vld [vmem:[#allocation7 + $0x68] sm:$0xff]  ;;  %v266_v38 = vld [vmem:[#allocation7 + $0x5] ss:$0 sm:$0xff]  ;;  %v267_v44 = vld [vmem:[#allocation7 + $0x6] ss:$0 sm:$0xff] }
  0x16   :  { %143 = vmatpush.msra.mxu1 %v118_v10  ;;  %210 = vmatpush.msra.mxu3 %v192_v34 }
  0x17   :  { %260 = vset.pattern.permute.xlu0 %v378_v2  ;;  %246 = vmatmul.msk.f32.vlgmr.msra.gmra.mxu1 %vm124_vm1, %v61_v11 }
  0x18   :  { %72 = vperm.xlu0 %260, %v60_v1   ;;  %180 = vmatpush.msra.mxu2 %v149_v26 }
  0x19   :  { %211 = vmatpush.msra.mxu3 %v191_v35 }
  0x1b   :  { %212 = vmatpush.msra.mxu3 %v190_v36 }
  0x1d   :  { %213 = vmatpush.msra.mxu3 %v189_v37 }
  0x81   :  { %v66_v13 = vpop.permute.xlu0 %65 }
  0x82   :  { %v69_v17 = vmul.f32 %v261_v14, %v66_v13 }
  0x8a   :  { %v73_v16 = vpop.permute.xlu0 %72 }
  0x8b   :  { %v76_v19 = vmul.f32 %v262_v15, %v73_v16 }
  0x8d   :  { %v77_v20 = vadd.f32 %v76_v19, %v69_v17 }
  0x8f   :  { %v80_v21 = vadd.f32 %v263_v18, %v77_v20 }
  0x91   :  { %vm81_vm3 = vcmp.gt.f32.partialorder %v80_v21, 0.0  ;;  %v82_v22 = vmul.f32 0.1, %v80_v21 }
  0x93   :  { %v83_v23 = vsel %vm81_vm3, %v80_v21, %v82_v22 }
  0x94   :  { %245 = vmatmul.msk.f32.vlgmr.msra.gmra.mxu0 %vm90_vm4, %v83_v23  ;;  %v145_v28 = vpop.f32.mrf.mxu1 }
  0x95   :  { %v146_v30 = vadd.f32 %v265_v27, %v145_v28 }
 0x111   :  { %v115_v31 = vpop.f32.mrf.mxu0 }
 0x112   :  { %v116_v32 = vadd.f32 %v264_v29, %v115_v31 }
 0x114   :  { %v148_v33 = vmul.f32 %v146_v30, %v116_v32  ;;  %154 = vrot.lane.b32.xlu1 %v116_v32, %s379_s0 }
 0x116   :  { %248 = vmatmul.msk.f32.vlgmr.msra.gmra.mxu2 %vm157_vm5, %v148_v33 }
 0x186   :  { %v155_v39 = vpop.permute.xlu1 %154 }
 0x199   :  { %v182_v40 = vpop.f32.mrf.mxu2 }
 0x19a   :  { %v183_v41 = vadd.f32 %v182_v40, %v155_v39 }
 0x19c   :  { %v187_v42 = vadd.f32 %v266_v38, %v183_v41 }
 0x19e   :  { %268 = vtanh.f32 %v187_v42 }
 0x1a4   :  { %v269_v43 = vpop.eup %268 }
 0x1a5   :  { %249 = vmatmul.msk.f32.vlgmr.msra.gmra.mxu3 %vm124_vm1, %v269_v43  ;;  %221 = vst.msk [vmem:[#allocation8] sm:$0x3] %vm220_vm6, %v269_v43 }
 0x1a6   :  { %234 = dma.vmem_to_hbm [thread:$0]  %s230_s5, 32, %s232_s8, [#allocation4]  }
 0x228   :  { %v215_v45 = vpop.f32.mrf.mxu3 }
 0x229   :  { %v216_v46 = vadd.f32 %v267_v44, %v215_v45 }
 0x22b   :  { %219 = vst.msk [vmem:[%s426_s3] sm:$0x3] %vm218_vm7, %v216_v46 }
 0x22c   :  { %370 = dma.done.wait [#allocation4], 32  }
 0x22d   :  { %371 = vsyncadd [#allocation4], 4294967264 }
 0x22e   :  { %241 = vsyncpa [#allocation3], 1 }
 0x22f   :  { %242 = vsyncpa [#allocation6], 1 }
 0x230   :  { %243 = vsyncpa [#allocation4], 1 }

</bundles_post_ra>
